<compile_context>
chip_gen: v5e
topology: v5e:2x2
jax: 0.10.0
libtpu: 0.0.40
codegen_flags: <defaults>
</compile_context>

<pallas_src>
import jax
import jax.numpy as jnp
from jax.experimental import pallas as pl
from jax.experimental.pallas import tpu as pltpu


_LANE = 128
# Widest lane-dense last-dim candidates (all multiples of 128).
_WIDTH_CANDIDATES = (2048, 1024, 512, 256, 128)
# ~1 MiB per block: with double buffering of input + output that is ~4 MiB of
# VMEM, comfortably inside the default scoped budget on v5e/v6e/v7x.
_TARGET_BLOCK_BYTES = 1 << 20


def _identity_kernel(x_ref, o_ref):
    # Pure pass-through: DetectionLayer.forward(x, ...) == x
    o_ref[...] = x_ref[...]


def _pick_tile_rows(rows, row_bytes):
    """Largest tile_rows that divides `rows`, keeps the block <= target bytes,
    and is a multiple of 32 (keeps bf16/int8 inputs fully packed). Falls back
    to multiples of 8 (f32 min tile); returns None if no clean divisor exists.
    """
    max_rows = max(32, int(_TARGET_BLOCK_BYTES // row_bytes))
    t = (min(rows, max_rows) // 32) * 32
    while t >= 32:
        if rows % t == 0:
            return t
        t -= 32
    t = (min(rows, max_rows) // 8) * 8
    while t >= 8:
        if rows % t == 0:
            return t
        t -= 8
    return None


def _identity_copy_2d(x2d, tile_rows):
    """Tiled, in-place identity copy over a lane-dense (rows, width) slab."""
    rows, width = x2d.shape
    grid = (rows // tile_rows,)
    nbytes = x2d.size * jnp.dtype(x2d.dtype).itemsize
    return pl.pallas_call(
        _identity_kernel,
        out_shape=jax.ShapeDtypeStruct((rows, width), x2d.dtype),
        grid_spec=pltpu.PrefetchScalarGridSpec(
            num_scalar_prefetch=0,
            grid=grid,
            in_specs=[pl.BlockSpec((tile_rows, width), lambda i: (i, 0))],
            out_specs=pl.BlockSpec((tile_rows, width), lambda i: (i, 0)),
        ),
        # Output aliases the input buffer: no second HBM allocation; XLA may
        # donate the operand (or insert a copy only if it is still live).
        input_output_aliases={0: 0},
        cost_estimate=pl.CostEstimate(
            flops=0, transcendentals=0, bytes_accessed=2 * nbytes),
        compiler_params=pltpu.CompilerParams(
            dimension_semantics=("parallel",)),
    )(x2d)


def detection_layer_forward(x, inp_dim, num_classes, anchors):
    """Pallas implementation of DetectionLayer.forward (identity pass-through).

    inp_dim / num_classes / anchors are accepted for API parity with the
    PyTorch module but (like the reference) do not affect the output.
    """
    del inp_dim, num_classes, anchors  # unused by the reference forward
    orig_shape = x.shape
    total = x.size
    if total == 0:
        return x

    itemsize = jnp.dtype(x.dtype).itemsize

    # Fast path: widest lane-dense slab width that divides the flat size.
    # The reshape of a contiguous buffer is a metadata change, not an HBM pass.
    width = None
    for w in _WIDTH_CANDIDATES:
        if total % w == 0:
            width = w
            break

    if width is not None:
        rows = total // width
        row_bytes = width * itemsize
        if rows * row_bytes <= _TARGET_BLOCK_BYTES:
            tile_rows = rows  # whole slab as one block (== full dims: legal)
        else:
            tile_rows = _pick_tile_rows(rows, row_bytes)
        if tile_rows is not None:
            x2d = x.reshape(rows, width)
            out2d = _identity_copy_2d(x2d, tile_rows)
            return out2d.reshape(orig_shape)

    # Rare fallback: flat size has no evenly tiled lane-dense factorisation.
    # Pad the flat view up to a block multiple, copy, and strip the padding.
    width = _LANE
    tile_rows = max(32, min(1024, (_TARGET_BLOCK_BYTES // (width * itemsize)) // 32 * 32))
    block_elems = tile_rows * width
    padded = pl.cdiv(total, block_elems) * block_elems
    x_flat = jnp.ravel(x)
    x_flat = jnp.pad(x_flat, (0, padded - total))
    x2d = x_flat.reshape(padded // width, width)
    out2d = _identity_copy_2d(x2d, tile_rows)
    return out2d.reshape(-1)[:total].reshape(orig_shape)


class DetectionLayer:
    """JAX/Pallas analogue of the PyTorch DetectionLayer module."""

    def __init__(self, anchors):
        self.anchors = anchors  # stored, unused in forward (matches reference)

    def __call__(self, x, inp_dim, num_classes, anchors):
        return detection_layer_forward(x, inp_dim, num_classes, anchors)


if __name__ == "__main__":
    key = jax.random.PRNGKey(0)
    anchors = [(10, 13), (16, 30), (33, 23)]
    layer = DetectionLayer(anchors)

    # Small NCHW feature map consistent with a YOLO detection head input.
    B, C, H, W = 2, 4, 16, 16
    x = jax.random.normal(key, (B, C, H, W), dtype=jnp.float32)
    out = jax.block_until_ready(
        layer(x, inp_dim=416, num_classes=80, anchors=anchors))
    assert out.shape == x.shape
    assert out.dtype == x.dtype
    assert bool(jnp.array_equal(out, x)), "identity forward mismatch"

    # Larger map to exercise the tiled, multi-step (parallel) grid path.
    x_big = jax.random.normal(jax.random.PRNGKey(1), (4, 64, 64, 64),
                              dtype=jnp.float32)
    out_big = jax.block_until_ready(
        layer(x_big, inp_dim=416, num_classes=80, anchors=anchors))
    assert out_big.shape == x_big.shape
    assert bool(jnp.array_equal(out_big, x_big)), "identity forward mismatch (tiled)"

    print("KERNEL_OK")
</pallas_src>

<mosaic_0001>
module attributes {stable_mosaic.version = 11 : i64} {
  func.func @_identity_kernel(%arg0: i32, %arg1: memref<1x2048xf32, #tpu.memory_space<vmem>>, %arg2: memref<1x2048xf32, #tpu.memory_space<vmem>>) attributes {dimension_semantics = [#tpu.dimension_semantics<parallel>], iteration_bounds = array<i64: 1>, scalar_prefetch = 0 : i64, scratch_operands = 0 : i64, tpu.core_type = #tpu.core_type<tc>, window_params = [{transform_indices = @transform_0, window_bounds = array<i64: 1, 2048>}, {transform_indices = @transform_1, window_bounds = array<i64: 1, 2048>}]} {
    %c0 = arith.constant 0 : index
    %c0_0 = arith.constant 0 : index
    %0 = vector.load %arg1[%c0, %c0_0] : memref<1x2048xf32, #tpu.memory_space<vmem>>, vector<1x2048xf32>
    %c0_1 = arith.constant 0 : index
    %c0_2 = arith.constant 0 : index
    %1 = vector.load %arg2[%c0_1, %c0_2] : memref<1x2048xf32, #tpu.memory_space<vmem>>, vector<1x2048xf32>
    tpu.vector_store %arg2[%c0_1, %c0_2], %0 {strides = array<i32>} : memref<1x2048xf32, #tpu.memory_space<vmem>>, vector<1x2048xf32>,
    return
  }
  func.func @transform_0(%arg0: i32) -> (i32, i32) {
    %c0_i32 = arith.constant 0 : i32
    %c0_i32_0 = arith.constant 0 : i32
    return %arg0, %c0_i32 : i32, i32
  }
  func.func @transform_1(%arg0: i32) -> (i32, i32) {
    %c0_i32 = arith.constant 0 : i32
    %c0_i32_0 = arith.constant 0 : i32
    return %arg0, %c0_i32 : i32, i32
  }
}

</mosaic_0001>

<bundles_post_ra>
// kernel: tpu_custom_call.1
= control target key start
LH: loop header
LB: loop body
LE: loop exit
PB: predicated region body
PF: predicated region fallthrough
CT: control target
= control target key end

     0   :  { %6 = vsyncpa [#allocation3], 0  ;;  %s116_s0 = inlined_call_operand.hbm [shape: f32[1,2048], index: 0, kind: input, shape index: {}, may-alias: {0,1}]   ;;  %s117_s1 = inlined_call_operand.hbm [shape: f32[1,2048], index: 1, kind: output, shape index: {}, may-alias: {0,1}]  }
   0x1   :  { %7 = vsyncpa [#allocation4], 0  ;;  %s13_s8 = sshll.u32 %s116_s0, 4  ;;  %s98_s9 = smov [#allocation2]   ;;  %s14_s8 = int_to_ptr.hbm [resolvable:$true] %s13_s8 }
   0x2   :  { %s15_s10 = sshll.u32 %s98_s9, 4  ;;  %s16_s10 = int_to_ptr.vmem [resolvable:$true] %s15_s10 }
   0x3   :  { %18 = dma.hbm_to_vmem [thread:$0]  %s14_s8, 256, %s16_s10, [#allocation3]  }
   0x4   :  { %94 = dma.done.wait [#allocation3], 256  }
   0x5   :  { %95 = vsyncadd [#allocation3], 4294967040  ;;  %s99_s11 = smov [#allocation5]   ;;  %s34_s15 = sshll.u32 %s117_s1, 4  ;;  %v23_v0 = vld [vmem:[#allocation2] sm:$0xff]  ;;  %v24_v1 = vld [vmem:[#allocation2 + $0x8] sm:$0xff]  ;;  %s35_s15 = int_to_ptr.hbm [resolvable:$true] %s34_s15 }
   0x6   :  { %s32_s12 = sshll.u32 %s99_s11, 4  ;;  %25 = vst [vmem:[#allocation5] sm:$0xff] %v23_v0  ;;  %s33_s12 = int_to_ptr.vmem [resolvable:$true] %s32_s12 }
   0x7   :  { %26 = vst [vmem:[#allocation5 + $0x8] sm:$0xff] %v24_v1 }
   0x8   :  { %37 = dma.vmem_to_hbm [thread:$0]  %s33_s12, 256, %s35_s15, [#allocation4]  }
   0x9   :  { %96 = dma.done.wait [#allocation4], 256  }
   0xa   :  { %97 = vsyncadd [#allocation4], 4294967040 }
   0xb   :  { %42 = vsyncpa [#allocation3], 1 }
   0xc   :  { %43 = vsyncpa [#allocation4], 1 }

</bundles_post_ra>
